<compile_context>
chip_gen: v5e
topology: v5e:2x2
jax: 0.10.0
libtpu: 0.0.40
codegen_flags: <defaults>
</compile_context>

<pallas_src>
import functools

import jax
import jax.numpy as jnp
from jax.experimental import pallas as pl
from jax.experimental.pallas import tpu as pltpu


def fm_kernel(bias_ref, lr_ref, emb_ref, out_ref, *, num_fields, embed_dim):
    """One batch tile of the FM forward.

    bias_ref: SMEM (1,)        scalar bias
    lr_ref:   VMEM (TB, F)     gathered per-(row, field) first-order weights
    emb_ref:  VMEM (TB, F*D)   lane-dense flattened field embeddings
    out_ref:  VMEM (TB, 1)     FM output tile (f32)
    """
    f32 = jnp.float32
    fd = num_fields * embed_dim

    # Upcast once; squares are taken in f32 so bf16-stored inputs keep accuracy.
    x = emb_ref[...].astype(f32)                       # (TB, F*D)
    lr = lr_ref[...].astype(f32)                       # (TB, F)

    # Stacked identity S (F*D, D): S[i, d] = 1 iff i % D == d. Built in-kernel
    # from iota (a handful of vregs of VALU work per grid step - negligible).
    row = jax.lax.broadcasted_iota(jnp.int32, (fd, embed_dim), 0)
    col = jax.lax.broadcasted_iota(jnp.int32, (fd, embed_dim), 1)
    s_mat = (row % embed_dim == col).astype(f32)       # (F*D, D)

    # Field reductions on the idle MXU instead of partial-lane slice-adds:
    #   y[b, d] = sum_f x[b, f, d]      q[b, d] = sum_f x[b, f, d]^2
    y = jnp.dot(x, s_mat, preferred_element_type=f32)        # (TB, D)
    q = jnp.dot(x * x, s_mat, preferred_element_type=f32)    # (TB, D)

    # 0.5 * sum_d ( (sum_f x)^2 - sum_f x^2 ): one narrow D-lane reduce.
    fm = 0.5 * jnp.sum(y * y - q, axis=-1, keepdims=True)    # (TB, 1)
    lr_out = jnp.sum(lr, axis=-1, keepdims=True)             # (TB, 1)

    out_ref[...] = (lr_out + bias_ref[0] + fm).astype(out_ref.dtype)
    # TODO(synk): final_activation defaults to None in FM_Layer; fuse
    # jax.nn.sigmoid(out) here if configured.


def fm_layer_forward(bias, lr_terms, embedding_vectors, *, block_b=None):
    """FM_Layer forward (final_activation=None, use_bias=True).

    bias:               (1,)       float32
    lr_terms:           (B, F)     f32/bf16 gathered LR weights, one per field
    embedding_vectors:  (B, F, D)  f32/bf16 field embeddings
    returns             (B, 1)     float32
    """
    B, F = lr_terms.shape
    _, _, D = embedding_vectors.shape

    # Lane-dense slab: last (lane) dim is F*D, full vreg utilization.
    emb_flat = embedding_vectors.reshape(B, F * D)

    # Batch tile: big enough that HBM traffic per step dwarfs the ~0.35 us
    # fixed per-grid-step overhead; generation/dtype tunable.
    if block_b is None:
        block_b = 8192 if jnp.dtype(embedding_vectors.dtype).itemsize <= 2 else 4096
    tb = min(block_b, B)
    if tb < B:
        # Multiple of 16 covers bf16 (16, 128) sublane packing (and f32 (8, 128)).
        tb = max(16, (tb // 16) * 16)
    num_tiles = pl.cdiv(B, tb)   # no jnp.pad: last partial block is masked

    # VMEM budget: double-buffered emb tile + lane-padded (tb, F)->(tb, 128)
    # lr tile + lane-padded (tb, 1)->(tb, 128) f32 out tile.
    e_item = jnp.dtype(embedding_vectors.dtype).itemsize
    l_item = jnp.dtype(lr_terms.dtype).itemsize
    vmem_need = 2 * tb * (F * D * e_item + 128 * l_item + 128 * 4)
    vmem_limit = max(32 * 1024 * 1024, int(1.25 * vmem_need))

    kernel = functools.partial(fm_kernel, num_fields=F, embed_dim=D)
    out = pl.pallas_call(
        kernel,
        out_shape=jax.ShapeDtypeStruct((B, 1), jnp.float32),
        grid=(num_tiles,),
        in_specs=[
            pl.BlockSpec(memory_space=pltpu.MemorySpace.SMEM),   # bias (1,)
            pl.BlockSpec((tb, F), lambda i: (i, 0)),             # lr tile
            pl.BlockSpec((tb, F * D), lambda i: (i, 0)),         # emb slab tile
        ],
        out_specs=pl.BlockSpec((tb, 1), lambda i: (i, 0)),
        compiler_params=pltpu.CompilerParams(
            # TODO(synk): on v7x, verify the 2-TC split in a profile; switch to
            # pltpu.CORE_PARALLEL if one TensorCore sits idle.
            dimension_semantics=("parallel",),
            vmem_limit_bytes=vmem_limit,
        ),
    )(bias, lr_terms, emb_flat)
    return out


if __name__ == "__main__":
    key = jax.random.PRNGKey(0)
    # batch, num feature fields, embed dim, vocab per field (small demo shapes)
    B, F, D, V = 200, 8, 16, 50

    k_x, k_lr, k_emb = jax.random.split(key, 3)

    # Categorical feature indices (what LR_Layer's EmbeddingLayer consumes).
    X = jax.random.randint(k_x, (B, F), 0, V, dtype=jnp.int32)

    # Per-field LR weight table (embedding dim 1) and zero-initialized bias
    # (matches nn.Parameter(torch.zeros(1))).
    lr_table = 0.01 * jax.random.normal(k_lr, (F, V), dtype=jnp.float32)
    bias = jnp.zeros((1,), dtype=jnp.float32)

    # Field embedding vectors passed into FM_Layer.forward, stored in bf16
    # (halves HBM traffic); the kernel accumulates in f32.
    embedding_vectors = (0.1 * jax.random.normal(
        k_emb, (B, F, D), dtype=jnp.float32)).astype(jnp.bfloat16)

    # Glue: gather per-(sample, field) linear weights -> (B, F).
    # TODO(synk): fold this gather into the kernel (prefetch X into SMEM and
    # keep the tiny (F, V) table resident in VMEM) to drop the extra HBM pass.
    lr_terms = lr_table[jnp.arange(F)[None, :], X].astype(jnp.bfloat16)

    # Small tile here to exercise multi-step pipelining and the partial last
    # block (200 = 128 + 72); production callers use the larger default tile.
    out = fm_layer_forward(bias, lr_terms, embedding_vectors, block_b=128)
    out = jax.block_until_ready(out)

    # Plain-JAX reference from the same bf16 inputs, accumulated in f32.
    emb_f32 = embedding_vectors.astype(jnp.float32)
    lr_f32 = lr_terms.astype(jnp.float32)
    lr_ref_out = jnp.sum(lr_f32, axis=1, keepdims=True) + bias[0]
    sum_f = jnp.sum(emb_f32, axis=1)
    sum_sq = jnp.sum(emb_f32 ** 2, axis=1)
    ref = lr_ref_out + 0.5 * jnp.sum(sum_f ** 2 - sum_sq, axis=1, keepdims=True)

    assert out.shape == (B, 1)
    # Headroom for the MXU f32 matmul path; outputs are O(0.1), so this still
    # catches any structural error.
    assert jnp.allclose(out, ref, atol=5e-3, rtol=5e-3), (
        float(jnp.max(jnp.abs(out - ref))))
    print("KERNEL_OK")
</pallas_src>

<mosaic_0001>
module attributes {stable_mosaic.version = 11 : i64} {
  func.func @fm_kernel(%arg0: i32, %arg1: memref<1xf32, #tpu.memory_space<smem>>, %arg2: memref<128x8xbf16, #tpu.memory_space<vmem>>, %arg3: memref<128x128xbf16, #tpu.memory_space<vmem>>, %arg4: memref<128x1xf32, #tpu.memory_space<vmem>>) attributes {dimension_semantics = [#tpu.dimension_semantics<parallel>], iteration_bounds = array<i64: 2>, scalar_prefetch = 0 : i64, scratch_operands = 0 : i64, tpu.core_type = #tpu.core_type<tc>, window_params = [{transform_indices = @transform_0, window_bounds = array<i64: 1>}, {transform_indices = @transform_1, window_bounds = array<i64: 128, 8>}, {transform_indices = @transform_2, window_bounds = array<i64: 128, 128>}, {transform_indices = @transform_3, window_bounds = array<i64: 128, 1>}]} {
    %c0 = arith.constant 0 : index
    %c0_0 = arith.constant 0 : index
    %0 = vector.load %arg3[%c0, %c0_0] : memref<128x128xbf16, #tpu.memory_space<vmem>>, vector<128x128xbf16>
    %1 = arith.extf %0 : vector<128x128xbf16> to vector<128x128xf32>
    %c0_1 = arith.constant 0 : index
    %c0_2 = arith.constant 0 : index
    %2 = vector.load %arg2[%c0_1, %c0_2] : memref<128x8xbf16, #tpu.memory_space<vmem>>, vector<128x8xbf16>
    %3 = arith.extf %2 : vector<128x8xbf16> to vector<128x8xf32>
    %4 = tpu.iota {dimensions = array<i32: 0>} : vector<128x16xi32>
    %5 = tpu.iota {dimensions = array<i32: 1>} : vector<128x16xi32>
    %c16_i32 = arith.constant 16 : i32
    %c0_i32 = arith.constant 0 : i32
    %6 = arith.cmpi eq, %c16_i32, %c0_i32 : i32
    %c1_i32 = arith.constant 1 : i32
    %7 = arith.select %6, %c1_i32, %c16_i32 : i32
    %8 = vector.broadcast %7 : i32 to vector<128x16xi32>
    %9 = arith.remsi %4, %8 : vector<128x16xi32>
    %c0_i32_3 = arith.constant 0 : i32
    %10 = vector.broadcast %c0_i32_3 : i32 to vector<128x16xi32>
    %11 = arith.cmpi ne, %9, %10 : vector<128x16xi32>
    %c0_i32_4 = arith.constant 0 : i32
    %12 = vector.broadcast %c0_i32_4 : i32 to vector<128x16xi32>
    %13 = arith.cmpi slt, %9, %12 : vector<128x16xi32>
    %c0_i32_5 = arith.constant 0 : i32
    %14 = arith.cmpi slt, %7, %c0_i32_5 : i32
    %15 = vector.broadcast %14 : i1 to vector<128x16xi1>
    %16 = vector.broadcast %15 : vector<128x16xi1> to vector<128x16xi1>
    %17 = arith.xori %13, %16 : vector<128x16xi1>
    %18 = arith.andi %17, %11 : vector<128x16xi1>
    %19 = vector.broadcast %7 : i32 to vector<128x16xi32>
    %20 = arith.addi %9, %19 : vector<128x16xi32>
    %21 = arith.select %18, %20, %9 : vector<128x16xi1>, vector<128x16xi32>
    %22 = arith.cmpi eq, %21, %5 : vector<128x16xi32>
    %23 = arith.extui %22 : vector<128x16xi1> to vector<128x16xi32>
    %24 = arith.sitofp %23 : vector<128x16xi32> to vector<128x16xf32>
    %cst = arith.constant dense<0.000000e+00> : vector<128x16xf32>
    %25 = tpu.matmul %1, %24, %cst {dimension_numbers = #tpu.dot_dimension_numbers<[1], [0], [0], [1], [0, 0, 1, 1], [], []>} : vector<128x128xf32>, vector<128x16xf32>, vector<128x16xf32> -> vector<128x16xf32>
    %26 = arith.mulf %1, %1 : vector<128x128xf32>
    %cst_6 = arith.constant dense<0.000000e+00> : vector<128x16xf32>
    %27 = tpu.matmul %26, %24, %cst_6 {dimension_numbers = #tpu.dot_dimension_numbers<[1], [0], [0], [1], [0, 0, 1, 1], [], []>} : vector<128x128xf32>, vector<128x16xf32>, vector<128x16xf32> -> vector<128x16xf32>
    %28 = arith.mulf %25, %25 : vector<128x16xf32>
    %29 = arith.subf %28, %27 : vector<128x16xf32>
    %cst_7 = arith.constant dense<0.000000e+00> : vector<128xf32>
    %30 = vector.multi_reduction <add>, %29, %cst_7 [1] : vector<128x16xf32> to vector<128xf32>
    %31 = vector.shape_cast %30 : vector<128xf32> to vector<128x1xf32>
    %cst_8 = arith.constant 5.000000e-01 : f32
    %32 = vector.broadcast %cst_8 : f32 to vector<128x1xf32>
    %33 = arith.mulf %32, %31 : vector<128x1xf32>
    %cst_9 = arith.constant dense<0.000000e+00> : vector<128xf32>
    %34 = vector.multi_reduction <add>, %3, %cst_9 [1] : vector<128x8xf32> to vector<128xf32>
    %35 = vector.shape_cast %34 : vector<128xf32> to vector<128x1xf32>
    %c0_10 = arith.constant 0 : index
    %36 = memref.load %arg1[%c0_10] : memref<1xf32, #tpu.memory_space<smem>>
    %37 = vector.broadcast %36 : f32 to vector<128x1xf32>
    %38 = arith.addf %35, %37 : vector<128x1xf32>
    %39 = arith.addf %38, %33 : vector<128x1xf32>
    %c0_11 = arith.constant 0 : index
    %c0_12 = arith.constant 0 : index
    %40 = vector.load %arg4[%c0_11, %c0_12] : memref<128x1xf32, #tpu.memory_space<vmem>>, vector<128x1xf32>
    tpu.vector_store %arg4[%c0_11, %c0_12], %39 {strides = array<i32>} : memref<128x1xf32, #tpu.memory_space<vmem>>, vector<128x1xf32>,
    return
  }
  func.func @transform_0(%arg0: i32) -> i32 {
    %c0_i32 = arith.constant 0 : i32
    %c0_i32_0 = arith.constant 0 : i32
    return %c0_i32 : i32
  }
  func.func @transform_1(%arg0: i32) -> (i32, i32) {
    %c0_i32 = arith.constant 0 : i32
    %c0_i32_0 = arith.constant 0 : i32
    return %arg0, %c0_i32 : i32, i32
  }
  func.func @transform_2(%arg0: i32) -> (i32, i32) {
    %c0_i32 = arith.constant 0 : i32
    %c0_i32_0 = arith.constant 0 : i32
    return %arg0, %c0_i32 : i32, i32
  }
  func.func @transform_3(%arg0: i32) -> (i32, i32) {
    %c0_i32 = arith.constant 0 : i32
    %c0_i32_0 = arith.constant 0 : i32
    return %arg0, %c0_i32 : i32, i32
  }
}

</mosaic_0001>

<bundles_post_ra>
// kernel: tpu_custom_call.1
= control target key start
LH: loop header
LB: loop body
LE: loop exit
PB: predicated region body
PF: predicated region fallthrough
CT: control target
= control target key end

     0   :  { %s1948_s0 = inlined_call_operand.<no memory space> [shape: f32[1], index: 0, kind: input, shape index: {}]   ;;  %s1949_s1 = inlined_call_operand.vmem [shape: bf16[200,8], index: 1, kind: input, shape index: {}]   ;;  %s1950_s2 = inlined_call_operand.vmem [shape: bf16[200,128], index: 2, kind: input, shape index: {}]   ;;  %s1951_s3 = inlined_call_operand.vmem [shape: f32[200,1], index: 3, kind: output, shape index: {}]  }
   0x1   :  { %8 = sst [smem:[#allocation2]] %s1948_s0 }
   0x2   :  { %s1577_s14 = smov 0   ;;  %s1579_s15 = smov 0  }
   0x3   :  { %s1581_s16 = smov 0  }
   0x4 LB: > { %s1590_s0 = sadd.s32 4294967295, %s1519_s16   ;;  %s1592_s17 = sadd.s32 1, %s1519_s16   ;;  %s1519_s16 = sphi %s1581_s16, %s1960_s16   ;;  %s1515_s15 = sphi %s1579_s15, %s1959_s15   ;;  %s1511_s14 = sphi %s1577_s14, %s1958_s14  }
   0x5   : > { %s91_s18 = ssub.s32 %s1519_s16, %s1592_s17  ;;  %s94_s19 = sadd.s32 1, %s1515_s15 }
   0x6   : > { %p92_p0 = scmp.eq.s32.totalorder %s91_s18, 0  ;;  %p104_p1 = scmp.ne.s32.totalorder %s1515_s15, %s1511_s14 }
   0x7   : > { %p105_p2 = scmp.eq.s32.totalorder %s1590_s0, 1  ;;  %p1192_p3 = scmp.ge.s32.totalorder %s1519_s16, 1 }
   0x8   : > { %s1600_s20 = scalar_select %p92_p0, %s1515_s15, %s94_s19  }
   0x9   : > { %p1602_p4 = por %p105_p2, %p104_p1  ;;  %p166_p5 = scmp.lt.s32.totalorder %s1519_s16, 3 }
   0xb   : > { %p167_p6 = pnand %p1192_p3, %p166_p5 }
   0xc   : > { %s1637_s22 = sshll.u32 (!%p167_p6), %s1590_s0, 4  ;;  %s850_s4 = sld [smem:[#allocation2]] (!%p167_p6) }
   0xd   : > { %170 = sbr.rel (%p167_p6) target bundleno = 428 (0x1ac), region = 32  ;;  %p207_p7 = scmp.lt.s32.totalorder (!%p167_p6), %s1637_s22, 24 }
   0xe   : > { %s199_s5 = sand.u32 (!%p167_p6), 1, %s1511_s14  }
   0xf   : > { %s1193_s6 = sshll.u32 (!%p167_p6), %s199_s5, 7 }
  0x10   : > { %s1793_s7 = scalar_lea.vmem (!%p167_p6), [#allocation3], %s1193_s6  }
  0x12   : > { %v299_v0 = vlaneseq  ;;  %v1553_v13 = vmov 1.0   ;;  %s1663_s23 = scalar_select %p207_p7, %s1637_s22, 24 }
  0x13   : > { %s909_s8 = ssub.s32 (%p1602_p4), 25, %s1637_s22  ;;  %s1263_s9 = sshll.u32 (%p1602_p4), %s1590_s0, 7 }
  0x14   : > { %v1606_v1 = vshrl.u32 %v299_v0, 7  ;;  %v1608_v2 = vand.u32 127, %v299_v0  ;;  %s1195_s24 = sshll.u32 %s1663_s23, 2  ;;  %p910_p8 = scmp.lt.s32.totalorder (%p1602_p4), %s909_s8, 16 }
  0x15   : > { %s1692_s27 = scalar_lea.vmem %s1950_s2, %s1195_s24  ;;  %s1734_s30 = scalar_lea.vmem %s1949_s1, %s1195_s24 }
  0x16   : > { %v315_v3 = vadd.s32 120, %v1606_v1  ;;  %v314_v4 = vadd.s32 112, %v1606_v1  ;;  %v313_v5 = vadd.s32 104, %v1606_v1  ;;  %v312_v6 = vadd.s32 96, %v1606_v1  ;;  %v1267_v34 = vld [vmem:[%s1692_s27] sm:$0xff]   ;;  %v1330_v45 = vld [vmem:[%s1692_s27 + $0x8] sm:$0xff]   ;;  %s1851_s12 = scalar_lea.vmem (%p1602_p4), %s1951_s3, %s1263_s9  }
  0x17   : > { %v311_v10 = vadd.s32 88, %v1606_v1  ;;  %v310_v12 = vadd.s32 80, %v1606_v1  ;;  %v309_v15 = vadd.s32 72, %v1606_v1  ;;  %v308_v17 = vadd.s32 64, %v1606_v1  ;;  %v1333_v35 = vld [vmem:[%s1692_s27 + $0x20] sm:$0xff]   ;;  %v1334_v46 = vld [vmem:[%s1692_s27 + $0x28] sm:$0xff]  }
  0x18   : > { %v427_v7 = vand.u32 15, %v315_v3  ;;  %v420_v8 = vand.u32 15, %v314_v4  ;;  %v413_v9 = vand.u32 15, %v313_v5  ;;  %v406_v11 = vand.u32 15, %v312_v6  ;;  %v1331_v55 = vld [vmem:[%s1692_s27 + $0x10] sm:$0xff]   ;;  %v1337_v59 = vld [vmem:[%s1734_s30 + $0x8] sm:$0xff]  }
  0x19   : > { %v399_v14 = vand.u32 15, %v311_v10  ;;  %v392_v16 = vand.u32 15, %v310_v12  ;;  %v385_v18 = vand.u32 15, %v309_v15  ;;  %v307_v19 = vadd.s32 56, %v1606_v1  ;;  %v1335_v56 = vld [vmem:[%s1692_s27 + $0x30] sm:$0xff]   ;;  %v1299_v60 = vld [vmem:[%s1734_s30] sm:$0xff]  }
  0x1a   : > { %vm525_vm0 = vcmp.eq.s32.totalorder %v427_v7, %v1608_v2  ;;  %vm524_vm1 = vcmp.eq.s32.totalorder %v420_v8, %v1608_v2  ;;  %vm523_vm2 = vcmp.eq.s32.totalorder %v413_v9, %v1608_v2  ;;  %vm522_vm3 = vcmp.eq.s32.totalorder %v406_v11, %v1608_v2  ;;  %v1338_v0 = vld [vmem:[%s1734_s30 + $0x10] sm:$0xff]   ;;  %v1339_v15 = vld [vmem:[%s1734_s30 + $0x18] sm:$0xff]  }
  0x1b   : > { %1214 = vmatpush.msk.msra.mxu0 %vm525_vm0, %v1553_v13  ;;  %1344 = vmatpush.msk.msra.mxu2 %vm525_vm0, %v1553_v13  ;;  %vm521_vm4 = vcmp.eq.s32.totalorder %v399_v14, %v1608_v2  ;;  %vm520_vm5 = vcmp.eq.s32.totalorder %v392_v16, %v1608_v2  ;;  %v378_v20 = vand.u32 15, %v308_v17  ;;  %v306_v21 = vadd.s32 48, %v1606_v1 }
  0x1c   : > { %1230 = vmatpush.msk.msra.mxu1 %vm525_vm0, %v1553_v13  ;;  %1360 = vmatpush.msk.msra.mxu3 %vm525_vm0, %v1553_v13  ;;  %vm519_vm6 = vcmp.eq.s32.totalorder %v385_v18, %v1608_v2  ;;  %v371_v22 = vand.u32 15, %v307_v19  ;;  %v305_v23 = vadd.s32 40, %v1606_v1  ;;  %v304_v25 = vadd.s32 32, %v1606_v1  ;;  %v1332_v18 = vld [vmem:[%s1692_s27 + $0x18] sm:$0xff]  }
  0x1d   : > { %1215 = vmatpush.msk.msra.mxu0 %vm524_vm1, %v1553_v13  ;;  %1345 = vmatpush.msk.msra.mxu2 %vm524_vm1, %v1553_v13  ;;  %vm518_vm7 = vcmp.eq.s32.totalorder %v378_v20, %v1608_v2  ;;  %v364_v24 = vand.u32 15, %v306_v21  ;;  %v303_v27 = vadd.s32 24, %v1606_v1  ;;  %v302_v29 = vadd.s32 16, %v1606_v1  ;;  %v1336_v19 = vld [vmem:[%s1692_s27 + $0x38] sm:$0xff]  }
  0x1e   : > { %1231 = vmatpush.msk.msra.mxu1 %vm524_vm1, %v1553_v13  ;;  %1361 = vmatpush.msk.msra.mxu3 %vm524_vm1, %v1553_v13  ;;  %vm517_vm8 = vcmp.eq.s32.totalorder %v371_v22, %v1608_v2  ;;  %v357_v26 = vand.u32 15, %v305_v23  ;;  %v350_v28 = vand.u32 15, %v304_v25  ;;  %v301_v31 = vadd.s32 8, %v1606_v1 }
  0x1f   : > { %1216 = vmatpush.msk.msra.mxu0 %vm523_vm2, %v1553_v13  ;;  %1346 = vmatpush.msk.msra.mxu2 %vm523_vm2, %v1553_v13  ;;  %vm516_vm9 = vcmp.eq.s32.totalorder %v364_v24, %v1608_v2  ;;  %v343_v30 = vand.u32 15, %v303_v27  ;;  %v336_v32 = vand.u32 15, %v302_v29  ;;  %v322_v36 = vand.u32 15, %v1606_v1  ;;  %v1341_v27 = vld [vmem:[%s1734_s30 + $0x28] sm:$0xff]  }
  0x20   : > { %1232 = vmatpush.msk.msra.mxu1 %vm523_vm2, %v1553_v13  ;;  %1362 = vmatpush.msk.msra.mxu3 %vm523_vm2, %v1553_v13  ;;  %vm515_vm10 = vcmp.eq.s32.totalorder %v357_v26, %v1608_v2  ;;  %vm514_vm11 = vcmp.eq.s32.totalorder %v350_v28, %v1608_v2  ;;  %v329_v33 = vand.u32 15, %v301_v31  ;;  %v1268_v37 = vunpack.c.l.bf16 %v1267_v34 }
  0x21   : > { %1217 = vmatpush.msk.msra.mxu0 %vm522_vm3, %v1553_v13  ;;  %1347 = vmatpush.msk.msra.mxu2 %vm522_vm3, %v1553_v13  ;;  %vm513_vm12 = vcmp.eq.s32.totalorder %v343_v30, %v1608_v2  ;;  %vm512_vm13 = vcmp.eq.s32.totalorder %v336_v32, %v1608_v2  ;;  %v1284_v38 = vunpack.c.l.bf16 %v1333_v35  ;;  %vm510_vm15 = vcmp.eq.s32.totalorder %v322_v36, %v1608_v2 }
  0x22   : > { %1233 = vmatpush.msk.msra.mxu1 %vm522_vm3, %v1553_v13  ;;  %1363 = vmatpush.msk.msra.mxu3 %vm522_vm3, %v1553_v13  ;;  %vm511_vm14 = vcmp.eq.s32.totalorder %v329_v33, %v1608_v2  ;;  %v623_v39 = vmul.f32 %v1268_v37, %v1268_v37  ;;  %v1269_v41 = vunpack.c.h.bf16 %v1267_v34  ;;  %v1285_v42 = vunpack.c.h.bf16 %v1333_v35 }
  0x23   : > { %1218 = vmatpush.msk.msra.mxu0 %vm521_vm4, %v1553_v13  ;;  %1348 = vmatpush.msk.msra.mxu2 %vm521_vm4, %v1553_v13  ;;  %v631_v40 = vmul.f32 %v1284_v38, %v1284_v38  ;;  %v1272_v47 = vunpack.c.l.bf16 %v1330_v45  ;;  %v1288_v48 = vunpack.c.l.bf16 %v1334_v46  ;;  %v1273_v51 = vunpack.c.h.bf16 %v1330_v45 }
  0x24   : > { %1234 = vmatpush.msk.msra.mxu1 %vm521_vm4, %v1553_v13  ;;  %1364 = vmatpush.msk.msra.mxu3 %vm521_vm4, %v1553_v13  ;;  %v624_v43 = vmul.f32 %v1269_v41, %v1269_v41  ;;  %v632_v44 = vmul.f32 %v1285_v42, %v1285_v42  ;;  %v1289_v52 = vunpack.c.h.bf16 %v1334_v46  ;;  %v1276_v57 = vunpack.c.l.bf16 %v1331_v55 }
  0x25   : > { %1219 = vmatpush.msk.msra.mxu0 %vm520_vm5, %v1553_v13  ;;  %1349 = vmatpush.msk.msra.mxu2 %vm520_vm5, %v1553_v13  ;;  %v625_v49 = vmul.f32 %v1272_v47, %v1272_v47  ;;  %v633_v50 = vmul.f32 %v1288_v48, %v1288_v48  ;;  %v626_v53 = vmul.f32 %v1273_v51, %v1273_v51  ;;  %v1292_v58 = vunpack.c.l.bf16 %v1335_v56 }
  0x26   : > { %1235 = vmatpush.msk.msra.mxu1 %vm520_vm5, %v1553_v13  ;;  %1365 = vmatpush.msk.msra.mxu3 %vm520_vm5, %v1553_v13  ;;  %v634_v54 = vmul.f32 %v1289_v52, %v1289_v52  ;;  %vm801_vm0 = vcmask 64512   ;;  %v1304_v61 = vunpack.c.l.bf16 %v1337_v59  ;;  %v1301_v62 = vunpack.c.h.bf16 %v1299_v60 }
  0x27   : > { %1220 = vmatpush.msk.msra.mxu0 %vm519_vm6, %v1553_v13  ;;  %1350 = vmatpush.msk.msra.mxu2 %vm519_vm6, %v1553_v13  ;;  %v1300_v63 = vunpack.c.l.bf16 %v1299_v60  ;;  %v627_v4 = vmul.f32 %v1276_v57, %v1276_v57  ;;  %v635_v5 = vmul.f32 %v1292_v58, %v1292_v58  ;;  %v1309_v6 = vunpack.c.h.bf16 %v1338_v0 }
  0x28   : > { %1236 = vmatpush.msk.msra.mxu1 %vm519_vm6, %v1553_v13  ;;  %1366 = vmatpush.msk.msra.mxu3 %vm519_vm6, %v1553_v13  ;;  %v808_v1 = vsel %vm801_vm0, %v1304_v61, 0.0  ;;  %v805_v2 = vsel %vm801_vm0, %v1301_v62, 0.0  ;;  %v1308_v7 = vunpack.c.l.bf16 %v1338_v0  ;;  %v1305_v8 = vunpack.c.h.bf16 %v1337_v59 }
  0x29   : > { %1221 = vmatpush.msk.msra.mxu0 %vm518_vm7, %v1553_v13  ;;  %1351 = vmatpush.msk.msra.mxu2 %vm518_vm7, %v1553_v13  ;;  %v802_v3 = vsel %vm801_vm0, %v1300_v63, 0.0  ;;  %v1277_v9 = vunpack.c.h.bf16 %v1331_v55  ;;  %v1293_v10 = vunpack.c.h.bf16 %v1335_v56  ;;  %v817_v11 = vsel %vm801_vm0, %v1309_v6, 0.0 }
  0x2a   : > { %1237 = vmatpush.msk.msra.mxu1 %vm518_vm7, %v1553_v13  ;;  %1367 = vmatpush.msk.msra.mxu3 %vm518_vm7, %v1553_v13  ;;  %v814_v12 = vsel %vm801_vm0, %v1308_v7, 0.0  ;;  %v811_v14 = vsel %vm801_vm0, %v1305_v8, 0.0  ;;  %v1313_v21 = vunpack.c.h.bf16 %v1339_v15  ;;  %v1312_v22 = vunpack.c.l.bf16 %v1339_v15 }
  0x2b   : > { %1222 = vmatpush.msk.msra.mxu0 %vm517_vm8, %v1553_v13  ;;  %1352 = vmatpush.msk.msra.mxu2 %vm517_vm8, %v1553_v13  ;;  %v628_v16 = vmul.f32 %v1277_v9, %v1277_v9  ;;  %v636_v17 = vmul.f32 %v1293_v10, %v1293_v10  ;;  %v1280_v23 = vunpack.c.l.bf16 %v1332_v18  ;;  %v1296_v24 = vunpack.c.l.bf16 %v1336_v19 }
  0x2c   : > { %1238 = vmatpush.msk.msra.mxu1 %vm517_vm8, %v1553_v13  ;;  %1368 = vmatpush.msk.msra.mxu3 %vm517_vm8, %v1553_v13  ;;  %v823_v26 = vsel %vm801_vm0, %v1313_v21, 0.0  ;;  %v820_v28 = vsel %vm801_vm0, %v1312_v22, 0.0  ;;  %v1321_v31 = vunpack.c.h.bf16 %v1341_v27  ;;  %v1281_v32 = vunpack.c.h.bf16 %v1332_v18 }
  0x2d   : > { %1223 = vmatpush.msk.msra.mxu0 %vm516_vm9, %v1553_v13  ;;  %1353 = vmatpush.msk.msra.mxu2 %vm516_vm9, %v1553_v13  ;;  %v629_v29 = vmul.f32 %v1280_v23, %v1280_v23  ;;  %v637_v30 = vmul.f32 %v1296_v24, %v1296_v24  ;;  %v1297_v33 = vunpack.c.h.bf16 %v1336_v19  ;;  %vm736_vm1 = vcmask 130048  }
  0x2e   : > { %1239 = vmatpush.msk.msra.mxu1 %vm516_vm9, %v1553_v13  ;;  %1369 = vmatpush.msk.msra.mxu3 %vm516_vm9, %v1553_v13  ;;  %v835_v34 = vsel %vm801_vm0, %v1321_v31, 0.0  ;;  %v630_v35 = vmul.f32 %v1281_v32, %v1281_v32  ;;  %vm884_vm2 = vcmask 7168  }
  0x2f   : > { %1224 = vmatpush.msk.msra.mxu0 %vm515_vm10, %v1553_v13  ;;  %1354 = vmatpush.msk.msra.mxu2 %vm515_vm10, %v1553_v13  ;;  %v638_v36 = vmul.f32 %v1297_v33, %v1297_v33 }
  0x30   : > { %1240 = vmatpush.msk.msra.mxu1 %vm515_vm10, %v1553_v13  ;;  %1370 = vmatpush.msk.msra.mxu3 %vm515_vm10, %v1553_v13 }
  0x31   : > { %1225 = vmatpush.msk.msra.mxu0 %vm514_vm11, %v1553_v13  ;;  %1355 = vmatpush.msk.msra.mxu2 %vm514_vm11, %v1553_v13 }
  0x32   : > { %1241 = vmatpush.msk.msra.mxu1 %vm514_vm11, %v1553_v13  ;;  %1371 = vmatpush.msk.msra.mxu3 %vm514_vm11, %v1553_v13 }
  0x33   : > { %1226 = vmatpush.msk.msra.mxu0 %vm513_vm12, %v1553_v13  ;;  %1356 = vmatpush.msk.msra.mxu2 %vm513_vm12, %v1553_v13 }
  0x34   : > { %1242 = vmatpush.msk.msra.mxu1 %vm513_vm12, %v1553_v13  ;;  %1372 = vmatpush.msk.msra.mxu3 %vm513_vm12, %v1553_v13 }
  0x35   : > { %1227 = vmatpush.msk.msra.mxu0 %vm512_vm13, %v1553_v13  ;;  %1357 = vmatpush.msk.msra.mxu2 %vm512_vm13, %v1553_v13 }
  0x36   : > { %1243 = vmatpush.msk.msra.mxu1 %vm512_vm13, %v1553_v13  ;;  %1373 = vmatpush.msk.msra.mxu3 %vm512_vm13, %v1553_v13 }
  0x37   : > { %1228 = vmatpush.msk.msra.mxu0 %vm511_vm14, %v1553_v13  ;;  %1358 = vmatpush.msk.msra.mxu2 %vm511_vm14, %v1553_v13 }
  0x38   : > { %1244 = vmatpush.msk.msra.mxu1 %vm511_vm14, %v1553_v13  ;;  %1374 = vmatpush.msk.msra.mxu3 %vm511_vm14, %v1553_v13 }
  0x39   : > { %1229 = vmatpush.msk.msra.mxu0 %vm510_vm15, %v1553_v13  ;;  %1359 = vmatpush.msk.msra.mxu2 %vm510_vm15, %v1553_v13 }
  0x3a   : > { %574 = vmatmul.f32.vlgmr.msra.gmra.mxu0 %v1268_v37  ;;  %598 = vmatmul.f32.vlgmr.msra.gmra.mxu2 %v1284_v38  ;;  %v1320_v37 = vunpack.c.l.bf16 %v1341_v27 }
  0x3b   : > { %1245 = vmatpush.msk.msra.mxu1 %vm510_vm15, %v1553_v13  ;;  %1375 = vmatpush.msk.msra.mxu3 %vm510_vm15, %v1553_v13  ;;  %v1340_v13 = vld [vmem:[%s1734_s30 + $0x20] sm:$0xff]  }
  0x3c   : > { %655 = vmatmul.f32.vlgmr.msra.gmra.mxu1 %v623_v39  ;;  %679 = vmatmul.f32.vlgmr.msra.gmra.mxu3 %v631_v40  ;;  %v1316_v20 = vunpack.c.l.bf16 %v1340_v13  ;;  %v832_v38 = vsel %vm801_vm0, %v1320_v37, 0.0  ;;  %v1317_v39 = vunpack.c.h.bf16 %v1340_v13 }
  0x3d   : > { %809 = vadd.xlane.f32.xlu0 %v808_v1  ;;  %806 = vadd.xlane.f32.xlu2 %v805_v2 }
  0x3e   : > { %803 = vadd.xlane.f32.xlu1 %v802_v3  ;;  %v826_v25 = vsel %vm801_vm0, %v1316_v20, 0.0  ;;  %v829_v40 = vsel %vm801_vm0, %v1317_v39, 0.0 }
  0x42   : > { %577 = vmatmul.f32.gmra.mxu0 %v1269_v41  ;;  %601 = vmatmul.f32.gmra.mxu2 %v1285_v42  ;;  %v1757_v41 = vld [vmem:[%s1734_s30 + $0x30] sm:$0xff]  }
  0x43   : > { %v1324_v42 = vunpack.c.l.bf16 %v1757_v41 }
  0x44   : > { %658 = vmatmul.f32.gmra.mxu1 %v624_v43  ;;  %682 = vmatmul.f32.gmra.mxu3 %v632_v44 }
  0x45   : > { %818 = vadd.xlane.f32.xlu0 %v817_v11  ;;  %815 = vadd.xlane.f32.xlu2 %v814_v12  ;;  %v838_v43 = vsel %vm801_vm0, %v1324_v42, 0.0 }
  0x46   : > { %812 = vadd.xlane.f32.xlu1 %v811_v14 }
  0x4a   : > { %580 = vmatmul.f32.gmra.mxu0 %v1272_v47  ;;  %604 = vmatmul.f32.gmra.mxu2 %v1288_v48 }
  0x4c   : > { %661 = vmatmul.f32.gmra.mxu1 %v625_v49  ;;  %685 = vmatmul.f32.gmra.mxu3 %v633_v50 }
  0x4d   : > { %827 = vadd.xlane.f32.xlu0 %v826_v25  ;;  %824 = vadd.xlane.f32.xlu2 %v823_v26 }
  0x4e   : > { %821 = vadd.xlane.f32.xlu1 %v820_v28 }
  0x52   : > { %583 = vmatmul.f32.gmra.mxu0 %v1273_v51  ;;  %607 = vmatmul.f32.gmra.mxu2 %v1289_v52 }
  0x54   : > { %664 = vmatmul.f32.gmra.mxu1 %v626_v53  ;;  %688 = vmatmul.f32.gmra.mxu3 %v634_v54 }
  0x55   : > { %836 = vadd.xlane.f32.xlu0 %v835_v34  ;;  %833 = vadd.xlane.f32.xlu2 %v832_v38 }
  0x56   : > { %830 = vadd.xlane.f32.xlu1 %v829_v40 }
  0x5a   : > { %586 = vmatmul.f32.gmra.mxu0 %v1276_v57  ;;  %610 = vmatmul.f32.gmra.mxu2 %v1292_v58 }
  0x5c   : > { %667 = vmatmul.f32.gmra.mxu1 %v627_v4  ;;  %691 = vmatmul.f32.gmra.mxu3 %v635_v5 }
  0x5e   : > { %839 = vadd.xlane.f32.xlu1 %v838_v43 }
  0x62   : > { %589 = vmatmul.f32.gmra.mxu0 %v1277_v9  ;;  %613 = vmatmul.f32.gmra.mxu2 %v1293_v10 }
  0x64   : > { %670 = vmatmul.f32.gmra.mxu1 %v628_v16  ;;  %694 = vmatmul.f32.gmra.mxu3 %v636_v17 }
  0x6a   : > { %592 = vmatmul.f32.gmra.mxu0 %v1280_v23  ;;  %616 = vmatmul.f32.gmra.mxu2 %v1296_v24 }
  0x6c   : > { %673 = vmatmul.f32.gmra.mxu1 %v629_v29  ;;  %697 = vmatmul.f32.gmra.mxu3 %v637_v30 }
  0x72   : > { %595 = vmatmul.f32.gmra.mxu0 %v1281_v32  ;;  %619 = vmatmul.f32.gmra.mxu2 %v1297_v33 }
  0x74   : > { %676 = vmatmul.f32.gmra.mxu1 %v630_v35  ;;  %700 = vmatmul.f32.gmra.mxu3 %v638_v36 }
  0xb7   : > { %v575_v44 = vpop.f32.mrf.mxu0 }
  0xb8   : > { %v704_v45 = vmul.f32 %v575_v44, %v575_v44 }
  0xb9   : > { %v656_v46 = vpop.f32.mrf.mxu1 }
  0xba   : > { %v720_v47 = vsub.f32 %v704_v45, %v656_v46 }
  0xbc   : > { %v737_v48 = vsel %vm736_vm1, %v720_v47, 0.0 }
  0xbd   : > { %v599_v49 = vpop.f32.mrf.mxu2  ;;  %738 = vadd.xlane.f32.xlu0 %v737_v48 }
  0xbe   : > { %v712_v50 = vmul.f32 %v599_v49, %v599_v49 }
  0xbf   : > { %v578_v51 = vpop.f32.mrf.mxu0  ;;  %v680_v52 = vpop.f32.mrf.mxu3 }
  0xc0   : > { %v705_v53 = vmul.f32 %v578_v51, %v578_v51  ;;  %v728_v54 = vsub.f32 %v712_v50, %v680_v52 }
  0xc1   : > { %v659_v55 = vpop.f32.mrf.mxu1 }
  0xc2   : > { %v721_v56 = vsub.f32 %v705_v53, %v659_v55  ;;  %v761_v57 = vsel %vm736_vm1, %v728_v54, 0.0  ;;  %v1343_v55 = vld [vmem:[%s1734_s30 + $0x38] sm:$0xff]  }
  0xc3   : > { %762 = vadd.xlane.f32.xlu2 %v761_v57  ;;  %v1325_v57 = vunpack.c.h.bf16 %v1757_v41  ;;  %v810_v41 = vpop.xlane.xlu0 %809 }
  0xc4   : > { %v740_v58 = vsel %vm736_vm1, %v721_v56, 0.0 }
  0xc5   : > { %v602_v59 = vpop.f32.mrf.mxu2  ;;  %741 = vadd.xlane.f32.xlu0 %v740_v58 }
  0xc6   : > { %v713_v60 = vmul.f32 %v602_v59, %v602_v59 }
  0xc7   : > { %v581_v61 = vpop.f32.mrf.mxu0  ;;  %v683_v62 = vpop.f32.mrf.mxu3 }
  0xc8   : > { %v706_v63 = vmul.f32 %v581_v61, %v581_v61  ;;  %v729_v0 = vsub.f32 %v713_v60, %v683_v62  ;;  %v1329_v60 = vunpack.c.h.bf16 %v1343_v55 }
  0xc9   : > { %v662_v1 = vpop.f32.mrf.mxu1 }
  0xca   : > { %v722_v2 = vsub.f32 %v706_v63, %v662_v1  ;;  %v764_v3 = vsel %vm736_vm1, %v729_v0, 0.0  ;;  %v841_v63 = vsel %vm801_vm0, %v1325_v57, 0.0  ;;  %v847_v1 = vsel %vm801_vm0, %v1329_v60, 0.0 }
  0xcc   : > { %v743_v4 = vsel %vm736_vm1, %v722_v2, 0.0  ;;  %v1328_v2 = vunpack.c.l.bf16 %v1343_v55 }
  0xcd   : > { %v605_v5 = vpop.f32.mrf.mxu2  ;;  %765 = vadd.xlane.f32.xlu0 %v764_v3  ;;  %744 = vadd.xlane.f32.xlu1 %v743_v4  ;;  %v807_v4 = vpop.xlane.xlu2 %806 }
  0xce   : > { %v714_v6 = vmul.f32 %v605_v5, %v605_v5  ;;  %v844_v3 = vsel %vm801_vm0, %v1328_v2, 0.0  ;;  %v804_v5 = vpop.xlane.xlu1 %803 }
  0xcf   : > { %v584_v7 = vpop.f32.mrf.mxu0  ;;  %v686_v8 = vpop.f32.mrf.mxu3 }
  0xd0   : > { %v730_v9 = vsub.f32 %v714_v6, %v686_v8  ;;  %v707_v11 = vmul.f32 %v584_v7, %v584_v7  ;;  %v1782_v6 = vpop.xlane.xlu0 %818 }
  0xd1   : > { %v665_v10 = vpop.f32.mrf.mxu1 }
  0xd2   : > { %v767_v12 = vsel %vm736_vm1, %v730_v9, 0.0  ;;  %v723_v17 = vsub.f32 %v707_v11, %v665_v10 }
  0xd4   : > { %v746_v23 = vsel %vm736_vm1, %v723_v17, 0.0 }
  0xd5   : > { %v608_v13 = vpop.f32.mrf.mxu2  ;;  %768 = vadd.xlane.f32.xlu1 %v767_v12  ;;  %v816_v7 = vpop.xlane.xlu2 %815 }
  0xd6   : > { %v715_v14 = vmul.f32 %v608_v13, %v608_v13  ;;  %v813_v8 = vpop.xlane.xlu1 %812 }
  0xd7   : > { %v587_v15 = vpop.f32.mrf.mxu0  ;;  %v689_v16 = vpop.f32.mrf.mxu3 }
  0xd8   : > { %v708_v18 = vmul.f32 %v587_v15, %v587_v15  ;;  %v731_v19 = vsub.f32 %v715_v14, %v689_v16  ;;  %v828_v9 = vpop.xlane.xlu0 %827  ;;  %v1789_v15 = vstv %s850_s4 }
  0xd9   : > { %v668_v20 = vpop.f32.mrf.mxu1  ;;  %v852_v17 = vadd.f32 %v1789_v15, %v804_v5 }
  0xda   : > { %v770_v21 = vsel %vm736_vm1, %v731_v19, 0.0  ;;  %v724_v22 = vsub.f32 %v708_v18, %v668_v20  ;;  %v860_v20 = vadd.f32 %v1789_v15, %v828_v9 }
  0xdb   : > { %771 = vadd.xlane.f32.xlu2 %v770_v21 }
  0xdc   : > { %v749_v30 = vsel %vm736_vm1, %v724_v22, 0.0 }
  0xdd   : > { %v611_v24 = vpop.f32.mrf.mxu2  ;;  %747 = vadd.xlane.f32.xlu1 %v746_v23  ;;  %v1784_v10 = vpop.xlane.xlu2 %824 }
  0xde   : > { %v716_v25 = vmul.f32 %v611_v24, %v611_v24  ;;  %v1786_v11 = vpop.xlane.xlu1 %821 }
  0xdf   : > { %v590_v26 = vpop.f32.mrf.mxu0  ;;  %v692_v27 = vpop.f32.mrf.mxu3 }
  0xe0   : > { %v709_v28 = vmul.f32 %v590_v26, %v590_v26  ;;  %v732_v29 = vsub.f32 %v716_v25, %v692_v27  ;;  %v837_v12 = vpop.xlane.xlu0 %836  ;;  %v853_v25 = vadd.f32 %v1789_v15, %v807_v4  ;;  %v859_v4 = vadd.f32 %v1789_v15, %v1784_v10 }
  0xe1   : > { %v671_v31 = vpop.f32.mrf.mxu1 }
  0xe2   : > { %v773_v32 = vsel %vm736_vm1, %v732_v29, 0.0  ;;  %v725_v33 = vsub.f32 %v709_v28, %v671_v31  ;;  %v854_v31 = vadd.f32 %v1789_v15, %v810_v41 }
  0xe3   : > { %774 = vadd.xlane.f32.xlu0 %v773_v32  ;;  %750 = vadd.xlane.f32.xlu2 %v749_v30 }
  0xe4   : > { %v752_v40 = vsel %vm736_vm1, %v725_v33, 0.0 }
  0xe5   : > { %v614_v34 = vpop.f32.mrf.mxu2  ;;  %v834_v13 = vpop.xlane.xlu2 %833 }
  0xe6   : > { %v717_v35 = vmul.f32 %v614_v34, %v614_v34  ;;  %v831_v14 = vpop.xlane.xlu1 %830 }
  0xe7   : > { %v593_v36 = vpop.f32.mrf.mxu0  ;;  %v695_v37 = vpop.f32.mrf.mxu3  ;;  %v861_v32 = vadd.f32 %v1789_v15, %v831_v14 }
  0xe8   : > { %v710_v38 = vmul.f32 %v593_v36, %v593_v36  ;;  %v733_v39 = vsub.f32 %v717_v35, %v695_v37 }
  0xe9   : > { %v674_v42 = vpop.f32.mrf.mxu1 }
  0xea   : > { %v726_v43 = vsub.f32 %v710_v38, %v674_v42  ;;  %v776_v44 = vsel %vm736_vm1, %v733_v39, 0.0  ;;  %v862_v38 = vadd.f32 %v1789_v15, %v834_v13 }
  0xeb   : > { %753 = vadd.xlane.f32.xlu2 %v752_v40  ;;  %777 = vadd.xlane.f32.xlu1 %v776_v44 }
  0xec   : > { %v755_v45 = vsel %vm736_vm1, %v726_v43, 0.0  ;;  %v863_v43 = vadd.f32 %v1789_v15, %v837_v12 }
  0xed   : > { %v617_v46 = vpop.f32.mrf.mxu2  ;;  %756 = vadd.xlane.f32.xlu0 %v755_v45 }
  0xee   : > { %v718_v47 = vmul.f32 %v617_v46, %v617_v46  ;;  %v840_v22 = vpop.xlane.xlu1 %839  ;;  %v855_v46 = vadd.f32 %v1789_v15, %v813_v8 }
  0xef   : > { %v596_v48 = vpop.f32.mrf.mxu0  ;;  %v698_v49 = vpop.f32.mrf.mxu3 }
  0xf0   : > { %v711_v50 = vmul.f32 %v596_v48, %v596_v48  ;;  %v734_v51 = vsub.f32 %v718_v47, %v698_v49 }
  0xf1   : > { %v677_v52 = vpop.f32.mrf.mxu1 }
  0xf2   : > { %v727_v53 = vsub.f32 %v711_v50, %v677_v52  ;;  %v779_v54 = vsel %vm736_vm1, %v734_v51, 0.0  ;;  %v856_v52 = vadd.f32 %v1789_v15, %v816_v7 }
  0xf3   : > { %780 = vadd.xlane.f32.xlu2 %v779_v54 }
  0xf4   : > { %v758_v56 = vsel %vm736_vm1, %v727_v53, 0.0  ;;  %v864_v53 = vadd.f32 %v1789_v15, %v840_v22 }
  0xf5   : > { %v620_v58 = vpop.f32.mrf.mxu2  ;;  %759 = vadd.xlane.f32.xlu1 %v758_v56 }
  0xf6   : > { %v719_v59 = vmul.f32 %v620_v58, %v620_v58 }
  0xf7   : > { %v701_v61 = vpop.f32.mrf.mxu3 }
  0xf8   : > { %v735_v62 = vsub.f32 %v719_v59, %v701_v61  ;;  %v857_v59 = vadd.f32 %v1789_v15, %v1782_v6 }
  0xfa   : > { %v782_v0 = vsel %vm736_vm1, %v735_v62, 0.0 }
  0xfb   : > { %783 = vadd.xlane.f32.xlu0 %v782_v0  ;;  %842 = vadd.xlane.f32.xlu2 %v841_v63  ;;  %v858_v63 = vadd.f32 %v1789_v15, %v1786_v11 }
  0xfd   : > { %848 = vadd.xlane.f32.xlu1 %v847_v1 }
 0x103   : > { %845 = vadd.xlane.f32.xlu0 %v844_v3 }
 0x130   : > { %v739_v16 = vpop.xlane.xlu0 %738 }
 0x131   : > { %v785_v18 = vmul.f32 0.5, %v739_v16 }
 0x133   : > { %v868_v19 = vadd.f32 %v852_v17, %v785_v18 }
 0x135   : > { %885 = vst.msk [vmem:[%s1793_s7] sm:$0xff] %vm884_vm2, %v868_v19 }
 0x136   : > { %v763_v21 = vpop.xlane.xlu2 %762 }
 0x137   : > { %v793_v23 = vmul.f32 0.5, %v763_v21 }
 0x138   : > { %v742_v24 = vpop.xlane.xlu0 %741 }
 0x139   : > { %v876_v26 = vadd.f32 %v860_v20, %v793_v23  ;;  %v786_v27 = vmul.f32 0.5, %v742_v24 }
 0x13b   : > { %893 = vst.msk [vmem:[%s1793_s7 + $0x40] sm:$0xff] %vm884_vm2, %v876_v26  ;;  %v869_v28 = vadd.f32 %v853_v25, %v786_v27 }
 0x13d   : > { %886 = vst.msk [vmem:[%s1793_s7 + $0x8] sm:$0xff] %vm884_vm2, %v869_v28 }
 0x140   : > { %v766_v29 = vpop.xlane.xlu0 %765  ;;  %v745_v30 = vpop.xlane.xlu1 %744 }
 0x141   : > { %v794_v33 = vmul.f32 0.5, %v766_v29  ;;  %v787_v34 = vmul.f32 0.5, %v745_v30 }
 0x143   : > { %v877_v35 = vadd.f32 %v861_v32, %v794_v33  ;;  %v870_v36 = vadd.f32 %v854_v31, %v787_v34 }
 0x145   : > { %894 = vst.msk [vmem:[%s1793_s7 + $0x48] sm:$0xff] %vm884_vm2, %v877_v35 }
 0x146   : > { %887 = vst.msk [vmem:[%s1793_s7 + $0x10] sm:$0xff] %vm884_vm2, %v870_v36 }
 0x148   : > { %v769_v37 = vpop.xlane.xlu1 %768 }
 0x149   : > { %v795_v39 = vmul.f32 0.5, %v769_v37 }
 0x14b   : > { %v878_v40 = vadd.f32 %v862_v38, %v795_v39 }
 0x14d   : > { %895 = vst.msk [vmem:[%s1793_s7 + $0x50] sm:$0xff] %vm884_vm2, %v878_v40 }
 0x14e   : > { %v772_v42 = vpop.xlane.xlu2 %771 }
 0x14f   : > { %v796_v44 = vmul.f32 0.5, %v772_v42 }
 0x150   : > { %v748_v45 = vpop.xlane.xlu1 %747 }
 0x151   : > { %v879_v47 = vadd.f32 %v863_v43, %v796_v44  ;;  %v788_v48 = vmul.f32 0.5, %v748_v45 }
 0x153   : > { %896 = vst.msk [vmem:[%s1793_s7 + $0x58] sm:$0xff] %vm884_vm2, %v879_v47  ;;  %v871_v49 = vadd.f32 %v855_v46, %v788_v48 }
 0x155   : > { %888 = vst.msk [vmem:[%s1793_s7 + $0x18] sm:$0xff] %vm884_vm2, %v871_v49 }
 0x156   : > { %v775_v50 = vpop.xlane.xlu0 %774  ;;  %v751_v51 = vpop.xlane.xlu2 %750 }
 0x157   : > { %v797_v54 = vmul.f32 0.5, %v775_v50  ;;  %v789_v55 = vmul.f32 0.5, %v751_v51 }
 0x159   : > { %v880_v56 = vadd.f32 %v864_v53, %v797_v54  ;;  %v872_v57 = vadd.f32 %v856_v52, %v789_v55 }
 0x15b   : > { %897 = vst.msk [vmem:[%s1793_s7 + $0x60] sm:$0xff] %vm884_vm2, %v880_v56 }
 0x15c   : > { %889 = vst.msk [vmem:[%s1793_s7 + $0x20] sm:$0xff] %vm884_vm2, %v872_v57 }
 0x15e   : > { %v754_v58 = vpop.xlane.xlu2 %753  ;;  %v778_v61 = vpop.xlane.xlu1 %777 }
 0x15f   : > { %v790_v60 = vmul.f32 0.5, %v754_v58  ;;  %v798_v9 = vmul.f32 0.5, %v778_v61 }
 0x160   : > { %v757_v62 = vpop.xlane.xlu0 %756 }
 0x161   : > { %v873_v0 = vadd.f32 %v857_v59, %v790_v60  ;;  %v791_v1 = vmul.f32 0.5, %v757_v62 }
 0x163   : > { %890 = vst.msk [vmem:[%s1793_s7 + $0x28] sm:$0xff] %vm884_vm2, %v873_v0  ;;  %v874_v2 = vadd.f32 %v858_v63, %v791_v1 }
 0x165   : > { %891 = vst.msk [vmem:[%s1793_s7 + $0x30] sm:$0xff] %vm884_vm2, %v874_v2 }
 0x166   : > { %v781_v3 = vpop.xlane.xlu2 %780 }
 0x167   : > { %v799_v18 = vmul.f32 0.5, %v781_v3 }
 0x168   : > { %v760_v41 = vpop.xlane.xlu1 %759 }
 0x169   : > { %v792_v5 = vmul.f32 0.5, %v760_v41 }
 0x16b   : > { %v875_v6 = vadd.f32 %v859_v4, %v792_v5 }
 0x16d   : > { %892 = vst.msk [vmem:[%s1793_s7 + $0x38] sm:$0xff] %vm884_vm2, %v875_v6 }
 0x16e   : > { %v784_v7 = vpop.xlane.xlu0 %783  ;;  %v843_v8 = vpop.xlane.xlu2 %842 }
 0x16f   : > { %v865_v11 = vadd.f32 %v1789_v15, %v843_v8  ;;  %v800_v13 = vmul.f32 0.5, %v784_v7 }
 0x170   : > { %v849_v12 = vpop.xlane.xlu1 %848 }
 0x171   : > { %v881_v14 = vadd.f32 %v865_v11, %v798_v9  ;;  %v867_v16 = vadd.f32 %v1789_v15, %v849_v12 }
 0x173   : > { %898 = vst.msk [vmem:[%s1793_s7 + $0x68] sm:$0xff] %vm884_vm2, %v881_v14  ;;  %v883_v17 = vadd.f32 %v867_v16, %v800_v13 }
 0x175   : > { %900 = vst.msk [vmem:[%s1793_s7 + $0x78] sm:$0xff] %vm884_vm2, %v883_v17 }
 0x176   : > { %v846_v10 = vpop.xlane.xlu0 %845 }
 0x177   : > { %v866_v19 = vadd.f32 %v1789_v15, %v846_v10  ;;  %907 = sbr.rel (!%p1602_p4) target bundleno = 428 (0x1ac), region = 36 }
 0x179   : > { %v882_v20 = vadd.f32 %v866_v19, %v799_v18 }
 0x17b   : > { %899 = vst.msk [vmem:[%s1793_s7 + $0x70] sm:$0xff] %vm884_vm2, %v882_v20 }
 0x17c   : > { %s1962_s8 = smov (!%p910_p8, %s909_s8), 16 }
 0x17d   : > { %s1248_s13 = sshll.u32 %s1962_s8, 3 }
 0x17e   : > { %p1251_p9 = scmp.eq.s32.totalorder %s1248_s13, 0 }
 0x17f   : > { %s1857_s14 = sshrl.u32 (!%p1251_p9), %s1962_s8, 4 }
 0x180   : > { %918 = sbr.rel (%p1251_p9) target bundleno = 428 (0x1ac), region = 40  ;;  %p1252_p10 = scmp.le.s32.totalorder (!%p1251_p9), %s1857_s14, 0 }
 0x185   : > { %1139 = sbr.rel (%p1252_p10) target bundleno = 411 (0x19b), region = 119  ;;  %s1953_s16 = smov (!%p1252_p10), %s1851_s12 }
 0x186   : > { %s1954_s0 = smov (!%p1252_p10), %s1793_s7  ;;  %s1866_s18 = smov (!%p1252_p10), 0  }
 0x187   : > { %s1868_s19 = smov (!%p1252_p10), 0  }
 0x18a LB: >> { %v1011_v15 = vld [vmem:[%s1527_s0] sm:$0xff]  ;;  %v1013_v21 = vld [vmem:[%s1527_s0 + $0x8] sm:$0xff]  ;;  %v1015_v22 = vld [vmem:[%s1527_s0 + $0x10] sm:$0xff]  ;;  %s1043_s21 = sadd.s32 1, %s1531_s18  ;;  %s1005_s19 = sadd.s32 1, %s1535_s19   ;;  %s1535_s19 = sphi %s1868_s19, %s1005_s19   ;;  %s1531_s18 = sphi %s1866_s18, %s1957_s18   ;;  %s1527_s0 = sphi %s1954_s0, %s1956_s0   ;;  %s1523_s16 = sphi %s1953_s16, %s1955_s16  }
 0x18b   : >> { %1012 = vst [vmem:[%s1523_s16] sm:$0xff] %v1011_v15  ;;  %v1017_v23 = vld [vmem:[%s1527_s0 + $0x18] sm:$0xff]  ;;  %p1044_p11 = scmp.ge.s32.totalorder %s1043_s21, %s1857_s14  ;;  %v1019_v24 = vld [vmem:[%s1527_s0 + $0x20] sm:$0xff]  ;;  %v1021_v25 = vld [vmem:[%s1527_s0 + $0x28] sm:$0xff]  ;;  %p1004_p12 = scmp.ge.s32.totalorder %s1005_s19, %s1857_s14 }
 0x18c   : >> { %1014 = vst [vmem:[%s1523_s16 + $0x8] sm:$0xff] %v1013_v21  ;;  %v1023_v26 = vld [vmem:[%s1527_s0 + $0x30] sm:$0xff]  ;;  %v1025_v27 = vld [vmem:[%s1527_s0 + $0x38] sm:$0xff]  ;;  %v1027_v28 = vld [vmem:[%s1527_s0 + $0x40] sm:$0xff] }
 0x18d   : >> { %1016 = vst [vmem:[%s1523_s16 + $0x10] sm:$0xff] %v1015_v22  ;;  %s1964_s21 = smov (%p1044_p11, %s1043_s21), 0  ;;  %v1029_v29 = vld [vmem:[%s1527_s0 + $0x48] sm:$0xff]  ;;  %v1031_v30 = vld [vmem:[%s1527_s0 + $0x50] sm:$0xff]  ;;  %v1033_v31 = vld [vmem:[%s1527_s0 + $0x58] sm:$0xff] }
 0x18e   : >> { %1018 = vst [vmem:[%s1523_s16 + $0x18] sm:$0xff] %v1017_v23  ;;  %s1253_s22 = sshll.u32 %s1964_s21, 7  ;;  %v1035_v32 = vld [vmem:[%s1527_s0 + $0x60] sm:$0xff]  ;;  %v1037_v33 = vld [vmem:[%s1527_s0 + $0x68] sm:$0xff]  ;;  %v1039_v34 = vld [vmem:[%s1527_s0 + $0x70] sm:$0xff]  ;;  %s1957_s18 = smov %s1964_s21 }
 0x18f   : >> { %1020 = vst [vmem:[%s1523_s16 + $0x20] sm:$0xff] %v1019_v24  ;;  %s1048_s23 = scalar_lea.vmem %s1793_s7, %s1253_s22 [#allocation3]   ;;  %s1049_s24 = scalar_lea.vmem %s1851_s12, %s1253_s22   ;;  %v1041_v35 = vld [vmem:[%s1527_s0 + $0x78] sm:$0xff] }
 0x190   : >> { %1022 = vst [vmem:[%s1523_s16 + $0x28] sm:$0xff] %v1021_v25  ;;  %s1956_s0 = smov %s1048_s23 }
 0x191   : >> { %1024 = vst [vmem:[%s1523_s16 + $0x30] sm:$0xff] %v1023_v26 }
 0x192   : >> { %1026 = vst [vmem:[%s1523_s16 + $0x38] sm:$0xff] %v1025_v27 }
 0x193   : >> { %1028 = vst [vmem:[%s1523_s16 + $0x40] sm:$0xff] %v1027_v28 }
 0x194   : >> { %1030 = vst [vmem:[%s1523_s16 + $0x48] sm:$0xff] %v1029_v29 }
 0x195   : >> { %1032 = vst [vmem:[%s1523_s16 + $0x50] sm:$0xff] %v1031_v30 }
 0x196   : >> { %1034 = vst [vmem:[%s1523_s16 + $0x58] sm:$0xff] %v1033_v31  ;;  %1007 = sbr.rel (!%p1004_p12) target bundleno = 394 (0x18a), region = 125 }
 0x197   : >> { %1036 = vst [vmem:[%s1523_s16 + $0x60] sm:$0xff] %v1035_v32 }
 0x198   : >> { %1038 = vst [vmem:[%s1523_s16 + $0x68] sm:$0xff] %v1037_v33 }
 0x199   : >> { %1040 = vst [vmem:[%s1523_s16 + $0x70] sm:$0xff] %v1039_v34 }
 0x19a   : >> { %1042 = vst [vmem:[%s1523_s16 + $0x78] sm:$0xff] %v1041_v35  ;;  %s1955_s16 = smov %s1049_s24 }
 0x19b PF: > { %s1930_s25 = sand.u32 15, %s1962_s8   ;;  %s1264_s26 = sshll.u32 %s1857_s14, 7 }
 0x19c   : > { %s1054_s27 = scalar_lea.vmem %s1793_s7, %s1264_s26 [#allocation3]   ;;  %s1056_s28 = scalar_lea.vmem %s1851_s12, %s1264_s26  }
 0x19d   : > { %p1258_p13 = scmp.le.s32.totalorder %s1930_s25, 0 }
 0x19e   : > { %s1537_s29 = smov (!%p1258_p13), %s1056_s28   ;;  %s1541_s30 = smov (!%p1258_p13), %s1054_s27  }
 0x19f   : > { %1153 = sbr.rel (%p1258_p13) target bundleno = 428 (0x1ac), region = 130  ;;  %s1545_s4 = smov (!%p1258_p13), 0  }
 0x1a0   : > { %s1549_s5 = smov (!%p1258_p13), 0  }
 0x1a4 LB: >> { %v1066_v36 = vld [vmem:[%s1543_s30] sm:$0xff]  ;;  %s1068_s6 = sadd.s32 1, %s1547_s4  ;;  %s1060_s5 = sadd.s32 1, %s1551_s5   ;;  %s1551_s5 = sphi %s1549_s5, %s1060_s5   ;;  %s1547_s4 = sphi %s1545_s4, %s1546_s4   ;;  %s1543_s30 = sphi %s1541_s30, %s1073_s30   ;;  %s1539_s29 = sphi %s1537_s29, %s1074_s29  }
 0x1a5   : >> { %1067 = vst [vmem:[%s1539_s29] sm:$0xff] %v1066_v36  ;;  %p1069_p0 = scmp.ge.s32.totalorder %s1068_s6, %s1930_s25  ;;  %p1059_p1 = scmp.ge.s32.totalorder %s1060_s5, %s1930_s25 }
 0x1a7   : >> { %s1966_s6 = smov (%p1069_p0, %s1068_s6), 0  ;;  %1062 = sbr.rel (!%p1059_p1) target bundleno = 420 (0x1a4), region = 136 }
 0x1a8   : >> { %s1259_s7 = sshll.u32 %s1966_s6, 3  ;;  %s1546_s4 = smov %s1966_s6  }
 0x1a9   : >> { %s1073_s30 = scalar_lea.vmem %s1054_s27, %s1259_s7 [#allocation3]   ;;  %s1074_s29 = scalar_lea.vmem %s1056_s28, %s1259_s7  }
 0x1ac PF: > { %p11_p2 = scmp.ge.s32.totalorder %s1592_s17, 4   ;;  %s1958_s14 = smov %s1515_s15 }
 0x1ad   : > { %s1959_s15 = smov %s1600_s20  ;;  %s1960_s16 = smov %s1592_s17 }
 0x1ae   :  { %13 = sbr.rel (!%p11_p2) target bundleno = 4 (0x4), region = 147 }

</bundles_post_ra>
